<compile_context>
chip_gen: v7x
topology: tpu7x:2x2x1
jax: 0.10.0
libtpu: 0.0.40
codegen_flags: <defaults>
</compile_context>

<pallas_src>
import functools

import jax
import jax.numpy as jnp
from jax.experimental import pallas as pl
from jax.experimental.pallas import tpu as pltpu

_VMEM_LIMIT = 64 * 1024 * 1024  # explicit scoped-VMEM budget (<= v7x physical)


# ---------------------------------------------------------------------------
# Embedding gather: table stays in HBM, rows fetched via double-buffered DMA
# ---------------------------------------------------------------------------
def _embed_kernel(ids_ref, table_ref, out_ref, sem_ref):
    n_tokens = out_ref.shape[0]

    def row_copy(i, slot):
        return pltpu.make_async_copy(
            table_ref.at[pl.ds(ids_ref[i], 1), :],
            out_ref.at[pl.ds(i, 1), :],
            sem_ref.at[slot])

    row_copy(0, 0).start()

    @pl.loop(0, n_tokens)
    def _(i):
        slot = i & 1

        @pl.when(i + 1 < n_tokens)
        def _():
            row_copy(i + 1, 1 - slot).start()

        row_copy(i, slot).wait()


def embed(token_ids_flat, table):
    n = token_ids_flat.shape[0]
    d = table.shape[1]
    return pl.pallas_call(
        _embed_kernel,
        out_shape=jax.ShapeDtypeStruct((n, d), table.dtype),
        in_specs=[
            pl.BlockSpec(memory_space=pltpu.MemorySpace.SMEM),  # token ids
            pl.BlockSpec(memory_space=pl.ANY),                  # table in HBM
        ],
        out_specs=pl.BlockSpec(memory_space=pltpu.MemorySpace.VMEM),
        scratch_shapes=[pltpu.SemaphoreType.DMA((2,))],
        compiler_params=pltpu.CompilerParams(vmem_limit_bytes=_VMEM_LIMIT),
    )(token_ids_flat, table)


# ---------------------------------------------------------------------------
# Shared helpers
# ---------------------------------------------------------------------------
def _layer_norm(x, w, b, eps=1e-5):
    mu = jnp.mean(x, axis=-1, keepdims=True)
    var = jnp.mean((x - mu) ** 2, axis=-1, keepdims=True)
    return (x - mu) * jax.lax.rsqrt(var + eps) * w + b


def _full(shape):
    nd = len(shape)
    return pl.BlockSpec(shape, lambda *_, _nd=nd: (0,) * _nd)


def _row_tile(n):
    for t in (512, 256, 128, 64, 32, 16, 8):
        if n % t == 0:
            return t
    return n


# ---------------------------------------------------------------------------
# Attention + residual + LayerNorm1 kernel (grid over batch rows)
# ---------------------------------------------------------------------------
def _attention_kernel(x_ref, maskbias_ref, wqkv_ref, bqkv_ref, wo_ref, bo_ref,
                      ln1w_ref, ln1b_ref, out_ref, *, nhead):
    x = x_ref[0]                                   # [S, D] f32
    s_len, d_model = x.shape
    hd = d_model // nhead
    scale = 1.0 / (hd ** 0.5)

    # Fused QKV projection: one [S, D] x [D, 3D] MXU pass (bf16 in, f32 acc).
    qkv = jnp.dot(x.astype(jnp.bfloat16), wqkv_ref[...],
                  preferred_element_type=jnp.float32) + bqkv_ref[...]   # [S, 3D]

    q = qkv[:, 0:d_model]
    k = qkv[:, d_model:2 * d_model]
    v = qkv[:, 2 * d_model:3 * d_model]

    # [S, D] -> [H, S, hd]; heads batched into a single 3-D contraction.
    qh = jnp.transpose(q.reshape(s_len, nhead, hd), (1, 0, 2)).astype(jnp.bfloat16)
    kh = jnp.transpose(k.reshape(s_len, nhead, hd), (1, 0, 2)).astype(jnp.bfloat16)
    vh = jnp.transpose(v.reshape(s_len, nhead, hd), (1, 0, 2)).astype(jnp.bfloat16)

    scores = jnp.einsum('hqd,hkd->hqk', qh, kh,
                        preferred_element_type=jnp.float32) * scale     # [H, S, S]
    scores = scores + maskbias_ref[...]            # [1, 1, S] additive key bias

    scores = scores - jnp.max(scores, axis=-1, keepdims=True)
    p = jnp.exp(scores)
    p = p * pl.reciprocal(jnp.sum(p, axis=-1, keepdims=True), approx=True)

    ctx = jnp.einsum('hqk,hkd->hqd', p.astype(jnp.bfloat16), vh,
                     preferred_element_type=jnp.float32)                # [H, S, hd]
    ctx = jnp.transpose(ctx, (1, 0, 2)).reshape(s_len, d_model)         # [S, D]

    attn = jnp.dot(ctx.astype(jnp.bfloat16), wo_ref[...],
                   preferred_element_type=jnp.float32) + bo_ref[...]

    out_ref[0] = _layer_norm(x + attn, ln1w_ref[...], ln1b_ref[...]).astype(out_ref.dtype)


# ---------------------------------------------------------------------------
# FFN + residual + LayerNorm2 (+ optional fused final LayerNorm) kernel
# (grid over flattened [B*S, D] row tiles)
# ---------------------------------------------------------------------------
def _ffn_kernel(x_ref, w1_ref, b1_ref, w2_ref, b2_ref, ln2w_ref, ln2b_ref,
                lnfw_ref, lnfb_ref, out_ref, *, apply_final_norm):
    x1 = x_ref[...]                                # [TM, D] f32
    h = jnp.dot(x1.astype(jnp.bfloat16), w1_ref[...],
                preferred_element_type=jnp.float32) + b1_ref[...]
    h = jax.nn.gelu(h, approximate=False)          # exact erf GELU (PyTorch 'gelu')
    ff = jnp.dot(h.astype(jnp.bfloat16), w2_ref[...],
                 preferred_element_type=jnp.float32) + b2_ref[...]
    x2 = _layer_norm(x1 + ff, ln2w_ref[...], ln2b_ref[...])
    if apply_final_norm:
        x2 = _layer_norm(x2, lnfw_ref[...], lnfb_ref[...])
    out_ref[...] = x2.astype(out_ref.dtype)


# ---------------------------------------------------------------------------
# One encoder layer (post-norm), final LayerNorm fused into the last layer
# ---------------------------------------------------------------------------
def encoder_layer(x, mask_bias, p, norm_w, norm_b, *, nhead, is_last):
    b, s, d = x.shape
    d3 = p["wqkv"].shape[1]
    ff = p["w1"].shape[1]

    # ---- self-attention + residual + LN1 (grid over batch) ----
    attn_kernel = functools.partial(_attention_kernel, nhead=nhead)
    x1 = pl.pallas_call(
        attn_kernel,
        out_shape=jax.ShapeDtypeStruct((b, s, d), jnp.float32),
        grid=(b,),
        in_specs=[
            pl.BlockSpec((1, s, d), lambda i: (i, 0, 0)),   # x (one batch row)
            pl.BlockSpec((1, 1, s), lambda i: (i, 0, 0)),   # compact key-pad bias
            _full((d, d3)), _full((1, d3)),
            _full((d, d)), _full((1, d)),
            _full((1, d)), _full((1, d)),
        ],
        out_specs=pl.BlockSpec((1, s, d), lambda i: (i, 0, 0)),
        compiler_params=pltpu.CompilerParams(
            dimension_semantics=("parallel",),
            vmem_limit_bytes=_VMEM_LIMIT),
    )(x, mask_bias, p["wqkv"], p["bqkv"], p["wo"], p["bo"], p["ln1w"], p["ln1b"])

    # ---- FFN + residual + LN2 (+ fused final LN) over flattened rows ----
    n = b * s
    tm = _row_tile(n)
    x1_flat = x1.reshape(n, d)
    ffn_kernel = functools.partial(_ffn_kernel, apply_final_norm=is_last)
    x2_flat = pl.pallas_call(
        ffn_kernel,
        out_shape=jax.ShapeDtypeStruct((n, d), jnp.float32),
        grid=(n // tm,),
        in_specs=[
            pl.BlockSpec((tm, d), lambda i: (i, 0)),
            _full((d, ff)), _full((1, ff)),
            _full((ff, d)), _full((1, d)),
            _full((1, d)), _full((1, d)),
            _full((1, d)), _full((1, d)),
        ],
        out_specs=pl.BlockSpec((tm, d), lambda i: (i, 0)),
        compiler_params=pltpu.CompilerParams(
            dimension_semantics=("parallel",),
            vmem_limit_bytes=_VMEM_LIMIT),
    )(x1_flat, p["w1"], p["b1"], p["w2"], p["b2"],
      p["ln2w"], p["ln2b"], norm_w, norm_b)
    return x2_flat.reshape(b, s, d)


# ---------------------------------------------------------------------------
# Full forward
# ---------------------------------------------------------------------------
def deruster_encoder_forward(token_ids, key_padding_mask, params):
    b, s = token_ids.shape
    table = params["embedding"]
    d = table.shape[1]

    emb = embed(token_ids.reshape(-1).astype(jnp.int32), table).reshape(b, s, d)

    # Compact [B, 1, S] additive key-padding bias; broadcast inside the kernel.
    # Large finite negative (not -inf) so fully-masked rows stay NaN-free.
    mask_bias = jnp.where(key_padding_mask, -1e30, 0.0).astype(jnp.float32)[:, None, :]

    x = emb
    n_layers = len(params["layers"])
    for li, layer_p in enumerate(params["layers"]):
        x = encoder_layer(x, mask_bias, layer_p,
                          params["norm_w"], params["norm_b"],
                          nhead=params["nhead"], is_last=(li == n_layers - 1))
    return x


# ---------------------------------------------------------------------------
# Deterministic synthetic parameter init (shapes follow the module __init__)
# ---------------------------------------------------------------------------
def init_params(key, vocab, d_model, nhead, dim_ff, num_layers):
    keys = jax.random.split(key, 1 + num_layers)

    def w(k, shape, scale=0.02):
        return (scale * jax.random.normal(k, shape)).astype(jnp.float32)

    params = {
        "nhead": nhead,
        "embedding": w(keys[0], (vocab, d_model)),
        "norm_w": jnp.ones((1, d_model), jnp.float32),
        "norm_b": jnp.zeros((1, d_model), jnp.float32),
        "layers": [],
    }
    for i in range(num_layers):
        lk = jax.random.split(keys[1 + i], 4)
        params["layers"].append({
            # fused QKV projection; matmul weights stored bf16 (f32 accumulation)
            "wqkv": w(lk[0], (d_model, 3 * d_model)).astype(jnp.bfloat16),
            "bqkv": jnp.zeros((1, 3 * d_model), jnp.float32),
            "wo": w(lk[1], (d_model, d_model)).astype(jnp.bfloat16),
            "bo": jnp.zeros((1, d_model), jnp.float32),
            "ln1w": jnp.ones((1, d_model), jnp.float32),
            "ln1b": jnp.zeros((1, d_model), jnp.float32),
            "w1": w(lk[2], (d_model, dim_ff)).astype(jnp.bfloat16),
            "b1": jnp.zeros((1, dim_ff), jnp.float32),
            "w2": w(lk[3], (dim_ff, d_model)).astype(jnp.bfloat16),
            "b2": jnp.zeros((1, d_model), jnp.float32),
            "ln2w": jnp.ones((1, d_model), jnp.float32),
            "ln2b": jnp.zeros((1, d_model), jnp.float32),
        })
    return params


if __name__ == "__main__":
    # Small, TPU-friendly downscale of (dim_model=512, nhead=8, layers=6, ffn=2048):
    B, S = 2, 8
    VOCAB, D, H, FF, LAYERS = 512, 128, 4, 512, 2

    params = init_params(jax.random.PRNGKey(0), VOCAB, D, H, FF, LAYERS)

    kid, _ = jax.random.split(jax.random.PRNGKey(0))
    token_ids = jax.random.randint(kid, (B, S), 0, VOCAB, dtype=jnp.int32)
    # True => padding position (ignored by attention), PyTorch convention.
    key_padding_mask = jnp.array(
        [[False] * 6 + [True] * 2,
         [False] * 5 + [True] * 3], dtype=jnp.bool_)

    out = deruster_encoder_forward(token_ids, key_padding_mask, params)
    out = jax.block_until_ready(out)

    assert out.shape == (B, S, D), out.shape
    assert bool(jnp.all(jnp.isfinite(out)))
    print("KERNEL_OK")
</pallas_src>

<mosaic_0001>
module attributes {stable_mosaic.version = 11 : i64} {
  func.func @_embed_kernel(%arg0: memref<16xi32, #tpu.memory_space<smem>>, %arg1: memref<512x128xf32, #tpu.memory_space<any>>, %arg2: memref<16x128xf32, #tpu.memory_space<vmem>>, %arg3: memref<2x!tpu.dma_semaphore, #tpu.memory_space<semaphore_mem>>) attributes {dimension_semantics = [], scalar_prefetch = 0 : i64, scratch_operands = 1 : i64, tpu.core_type = #tpu.core_type<tc>} {
    %c0 = arith.constant 0 : index
    %0 = memref.load %arg0[%c0] : memref<16xi32, #tpu.memory_space<smem>>
    %c0_i32 = arith.constant 0 : i32
    %c0_i32_0 = arith.constant 0 : i32
    %1 = tpu.memref_slice %arg1[%0, %c0_i32_0] : memref<512x128xf32, #tpu.memory_space<any>> -> memref<1x128xf32, #tpu.memory_space<any>>
    %c0_i32_1 = arith.constant 0 : i32
    %c0_i32_2 = arith.constant 0 : i32
    %2 = tpu.memref_slice %arg2[%c0_i32_1, %c0_i32_2] : memref<16x128xf32, #tpu.memory_space<vmem>> -> memref<1x128xf32, #tpu.memory_space<vmem>>
    %3 = tpu.memref_slice %arg3[%c0_i32] : memref<2x!tpu.dma_semaphore, #tpu.memory_space<semaphore_mem>> -> memref<1x!tpu.dma_semaphore, #tpu.memory_space<semaphore_mem>>
    %4 = tpu.memref_squeeze %3 : memref<1x!tpu.dma_semaphore, #tpu.memory_space<semaphore_mem>> -> memref<!tpu.dma_semaphore, #tpu.memory_space<semaphore_mem>>
    tpu.enqueue_dma source(%1 : memref<1x128xf32, #tpu.memory_space<any>>) target(%2 : memref<1x128xf32, #tpu.memory_space<vmem>>) target_semaphore(%4 : memref<!tpu.dma_semaphore, #tpu.memory_space<semaphore_mem>>)
    %c0_i32_3 = arith.constant 0 : i32
    %c16_i32 = arith.constant 16 : i32
    %5 = arith.addi %c0_i32_3, %c16_i32 : i32
    %c1_i32 = arith.constant 1 : i32
    scf.for %arg4 = %c0_i32_3 to %5 step %c1_i32  : i32 {
      %c1_i32_5 = arith.constant 1 : i32
      %6 = arith.muli %arg4, %c1_i32_5 : i32
      %c0_i32_6 = arith.constant 0 : i32
      %7 = arith.addi %c0_i32_6, %6 : i32
      %c1_i32_7 = arith.constant 1 : i32
      %8 = arith.andi %7, %c1_i32_7 : i32
      %c1_i32_8 = arith.constant 1 : i32
      %9 = arith.addi %7, %c1_i32_8 : i32
      %c16_i32_9 = arith.constant 16 : i32
      %10 = arith.cmpi slt, %9, %c16_i32_9 : i32
      %11 = arith.extui %10 : i1 to i32
      %c0_i32_10 = arith.constant 0 : i32
      %12 = arith.cmpi ne, %11, %c0_i32_10 : i32
      scf.if %12 {
        %c1_i32_13 = arith.constant 1 : i32
        %19 = arith.addi %7, %c1_i32_13 : i32
        %c1_i32_14 = arith.constant 1 : i32
        %20 = arith.subi %c1_i32_14, %8 : i32
        %21 = arith.index_cast %19 : i32 to index
        %22 = memref.load %arg0[%21] : memref<16xi32, #tpu.memory_space<smem>>
        %c0_i32_15 = arith.constant 0 : i32
        %23 = tpu.memref_slice %arg1[%22, %c0_i32_15] : memref<512x128xf32, #tpu.memory_space<any>> -> memref<1x128xf32, #tpu.memory_space<any>>
        %c0_i32_16 = arith.constant 0 : i32
        %24 = tpu.memref_slice %arg2[%19, %c0_i32_16] : memref<16x128xf32, #tpu.memory_space<vmem>> -> memref<1x128xf32, #tpu.memory_space<vmem>>
        %25 = tpu.memref_slice %arg3[%20] : memref<2x!tpu.dma_semaphore, #tpu.memory_space<semaphore_mem>> -> memref<1x!tpu.dma_semaphore, #tpu.memory_space<semaphore_mem>>
        %26 = tpu.memref_squeeze %25 : memref<1x!tpu.dma_semaphore, #tpu.memory_space<semaphore_mem>> -> memref<!tpu.dma_semaphore, #tpu.memory_space<semaphore_mem>>
        tpu.enqueue_dma source(%23 : memref<1x128xf32, #tpu.memory_space<any>>) target(%24 : memref<1x128xf32, #tpu.memory_space<vmem>>) target_semaphore(%26 : memref<!tpu.dma_semaphore, #tpu.memory_space<semaphore_mem>>)
      } else {
      }
      %13 = arith.index_cast %7 : i32 to index
      %14 = memref.load %arg0[%13] : memref<16xi32, #tpu.memory_space<smem>>
      %c0_i32_11 = arith.constant 0 : i32
      %15 = tpu.memref_slice %arg1[%14, %c0_i32_11] : memref<512x128xf32, #tpu.memory_space<any>> -> memref<1x128xf32, #tpu.memory_space<any>>
      %c0_i32_12 = arith.constant 0 : i32
      %16 = tpu.memref_slice %arg2[%7, %c0_i32_12] : memref<16x128xf32, #tpu.memory_space<vmem>> -> memref<1x128xf32, #tpu.memory_space<vmem>>
      %17 = tpu.memref_slice %arg3[%8] : memref<2x!tpu.dma_semaphore, #tpu.memory_space<semaphore_mem>> -> memref<1x!tpu.dma_semaphore, #tpu.memory_space<semaphore_mem>>
      %18 = tpu.memref_squeeze %17 : memref<1x!tpu.dma_semaphore, #tpu.memory_space<semaphore_mem>> -> memref<!tpu.dma_semaphore, #tpu.memory_space<semaphore_mem>>
      tpu.wait_dma2 semaphore(%18 : memref<!tpu.dma_semaphore, #tpu.memory_space<semaphore_mem>>) src(%15 : memref<1x128xf32, #tpu.memory_space<any>>) dst(%16 : memref<1x128xf32, #tpu.memory_space<vmem>>)
    }
    %c16_i32_4 = arith.constant 16 : i32
    return
  }
}

</mosaic_0001>

<bundles_post_ra>
// kernel: tpu_custom_call.1
= control target key start
LH: loop header
LB: loop body
LE: loop exit
PB: predicated region body
PF: predicated region fallthrough
CT: control target
= control target key end

     0   :  { %7 = vsyncpa [#allocation5], 0  ;;  %s354_s0 = inlined_call_operand.hbm [shape: s32[16], index: 0, kind: input, shape index: {}]   ;;  %s355_s1 = inlined_call_operand.hbm [shape: f32[512,128], index: 1, kind: input, shape index: {}]   ;;  %s356_s2 = inlined_call_operand.hbm [shape: f32[16,128], index: 2, kind: output, shape index: {}]  }
   0x1   :  { %8 = vsyncpa [#allocation4], 0  ;;  %s134_s11 = scalar_lea.hbm %s354_s0, 16 }
   0x2   :  { %p135_p0 = scmp.ne.s32.totalorder %s354_s0, %s134_s11  ;;  %p138_p1 = scmp.lt.u32.totalorder %s134_s11, %s354_s0 }
   0x4   :  { %p140_p2 = pnand %p138_p1, %p135_p0 }
   0x6   :  { %143 = shalt.err (!%p140_p2)
}
   0x7   :  { %s232_s16 = smov [#allocation3]  }
   0x8   :  { %16 = dma.hbm_to_smem %s354_s0, 16, %s232_s16, [#allocation5]  }
   0x9   :  { %222 = dma.done.wait [#allocation5], 16  }
   0xa   :  { %223 = vsyncadd [#allocation5], 4294967280 }
   0xb   :  { %20 = sfence }
   0xc   :  { %s21_s19 = sld [smem:[#allocation3]]  ;;  %s233_s20 = smov [#allocation6]  }
   0xd   :  { %s31_s21 = sshll.u32 %s233_s20, 4  ;;  %s146_s29 = scalar_lea.hbm %s355_s1, 8192  ;;  %s263_s21 = int_to_ptr.vmem [resolvable:$true] %s31_s21 }
  0x12   :  { %s112_s22 = sshll.u32 %s21_s19, 4 }
  0x13   :  { %s23_s25 = scalar_lea.hbm %s355_s1, %s112_s22 }
  0x14   :  { %s144_s26 = scalar_lea.hbm %s23_s25, 16  ;;  %p147_p4 = scmp.lt.u32.totalorder %s23_s25, %s355_s1 }
  0x15   :  { %p145_p3 = scmp.ne.s32.totalorder %s23_s25, %s144_s26  ;;  %p148_p5 = scmp.lt.u32.totalorder %s146_s29, %s144_s26 }
  0x16   :  { %p150_p7 = scmp.lt.u32.totalorder %s144_s26, %s23_s25 }
  0x17   :  { %p149_p6 = por %p148_p5, %p147_p4 }
  0x19   :  { %p151_p8 = por %p150_p7, %p149_p6 }
  0x1b   :  { %p152_p9 = pnand %p151_p8, %p145_p3 }
  0x1d   :  { %155 = shalt.err (!%p152_p9)  }
  0x1e   :  { %s156_s5 = scalar_lea.vmem %s263_s21, 16  ;;  %s281_s6 = scalar_lea.vmem %s263_s21, 256 }
  0x1f   :  { %p157_p10 = scmp.ne.s32.totalorder %s263_s21, %s156_s5  ;;  %p357_p11 = scmp.lt.s32.totalorder %s263_s21, %s263_s21 }
  0x20   :  { %p162_p12 = scmp.lt.s32.totalorder %s281_s6, %s156_s5 }
  0x22   :  { %p163_p13 = por %p162_p12, %p357_p11 }
  0x24   :  { %p164_p0 = pnand %p163_p13, %p157_p10 }
  0x26   :  { %167 = shalt.err (!%p164_p0)  }
  0x27   :  { %34 = dma.hbm_to_vmem [thread:$0]  %s23_s25, 16, %s263_s21, [#allocation2] }
  0x28   :  { %s290_s7 = smov 0  }
  0x29 LB: > { %s296_s8 = sadd.s32 1, %s230_s7   ;;  %s41_s11 = sand.u32 1, %s230_s7  ;;  %s230_s7 = sphi %s290_s7, %s358_s7  }
  0x2a   : > { %p121_p2 = scmp.lt.s32.totalorder %s296_s8, 16  ;;  %s103_s12 = scalar_lea.vmem [#allocation6], %s230_s7 }
  0x2b   : > { %s104_s13 = scalar_lea.vmem %s103_s12, 1 [#allocation6]  ;;  %s47_s15 = ssub.s32 1, %s41_s11 }
  0x2c   : > { %s118_s9 = scalar_select %p121_p2, [#allocation3], [#allocation13] }
  0x2d   : > { %s119_s10 = scalar_select %p121_p2, %s296_s8, 0 }
  0x2e   : > { %s60_s16 = sshll.u32 %s104_s13, 4  ;;  %s52_s22 = scalar_lea.sflag [#allocation2], %s47_s15  ;;  %s61_s16 = int_to_ptr.vmem [resolvable:$true] %s60_s16 }
  0x2f   : > { %s48_s14 = sld [smem:[%s118_s9 + %s119_s10]] }
  0x35   : > { %s114_s17 = sshll.u32 %s48_s14, 4 }
  0x36   : > { %s50_s20 = scalar_lea.hbm %s355_s1, %s114_s17 }
  0x37   : > { %s168_s23 = scalar_lea.hbm %s50_s20, 16  ;;  %p173_p6 = scmp.lt.u32.totalorder %s50_s20, %s355_s1 }
  0x38   : > { %p169_p3 = scmp.ne.s32.totalorder %s50_s20, %s168_s23  ;;  %p174_p7 = scmp.lt.u32.totalorder %s146_s29, %s168_s23 }
  0x39   : > { %p176_p9 = scmp.lt.u32.totalorder %s168_s23, %s50_s20 }
  0x3a   : > { %p170_p4 = pnand %p169_p3, %p121_p2  ;;  %p175_p8 = por %p174_p7, %p173_p6 }
  0x3c   : > { %p171_p5 = pneg %p170_p4  ;;  %p177_p10 = por %p176_p9, %p175_p8 }
  0x3e   : > { %p178_p12 = pnand %p177_p10, %p171_p5 }
  0x40   : > { %181 = shalt.err (!%p178_p12)  }
  0x41   : > { %s182_s28 = scalar_lea.vmem %s61_s16, 16  ;;  %p189_p4 = scmp.lt.s32.totalorder %s61_s16, %s263_s21 }
  0x42   : > { %p183_p13 = scmp.ne.s32.totalorder %s61_s16, %s182_s28  ;;  %p190_p11 = scmp.lt.s32.totalorder %s281_s6, %s182_s28 }
  0x44   : > { %p184_p0 = pnand %p183_p13, %p121_p2  ;;  %p191_p1 = por %p190_p11, %p189_p4 }
  0x46   : > { %p185_p3 = pneg %p184_p0 }
  0x48   : > { %p192_p6 = pnand %p191_p1, %p185_p3 }
  0x4a   : > { %195 = shalt.err (!%p192_p6)  }
  0x4b   : > { %120 = dma.hbm_to_vmem [thread:$0]  (%p121_p2), %s50_s20, 16, %s61_s16, %s52_s22 }
  0x4c   : > { %s65_s0 = scalar_lea.sflag [#allocation2], %s41_s11 }
  0x4d   : > { %224 = dma.done.wait %s65_s0, 16 }
  0x4e   : > { %225 = vsyncadd %s65_s0, 4294967280  ;;  %s358_s7 = smov %s296_s8  ;;  %p359_p5 = scmp.ge.s32.totalorder %s296_s8, 16 }
  0x4f   :  { %p197_p11 = scmp.ne.s32.totalorder (%p359_p5), %s263_s21, %s281_s6  ;;  %p202_p1 = scmp.lt.s32.totalorder (%p359_p5), %s281_s6, %s281_s6 }
  0x50   :  { %39 = sbr.rel (!%p359_p5) target bundleno = 41 (0x29), region = 53  ;;  %p360_p7 = scmp.lt.s32.totalorder (%p359_p5), %s263_s21, %s263_s21 }
  0x52   :  { %p203_p2 = por (%p359_p5), %p202_p1, %p360_p7 }
  0x54   :  { %p204_p8 = pnand (%p359_p5), %p203_p2, %p197_p11 }
  0x57   :  { %207 = shalt.err (!%p204_p8)
}
  0x58   :  { %s208_s4 = scalar_lea.hbm %s356_s2, 256 }
  0x59   :  { %p209_p9 = scmp.ne.s32.totalorder %s356_s2, %s208_s4  ;;  %p212_p10 = scmp.lt.u32.totalorder %s208_s4, %s356_s2 }
  0x5b   :  { %p214_p12 = pnand %p212_p10, %p209_p9 }
  0x5d   :  { %217 = shalt.err (!%p214_p12)
}
  0x5e   :  { %s234_s8 = smov 128   ;;  %s235_s6 = smov 8  }
  0x5f   :  { %80 = dma.vmem_to_hbm [thread:$0]  %s263_s21, 256, %s356_s2, [#allocation4], %s234_s8, %s234_s8, %s235_s6  }
  0x60   :  { %226 = dma.done.wait [#allocation4], 256  }
  0x61   :  { %227 = vsyncadd [#allocation4], 4294967040 }
  0x62   :  { %84 = vsyncpa [#allocation4], 1 }
  0x63   :  { %85 = vsyncpa [#allocation5], 1 }
  0x64   :  { %86 = vsyncmov [#allocation2] }
  0x67   :  { %s87_s11 = vpop.sfrf %86 }
  0x68   :  { %p115_p13 = scmp.ne.s32.totalorder %s87_s11, 0 }
  0x6a   :  { %91 = shalt.err (%p115_p13)  }
  0x6b   :  { %93 = vsyncmov [#allocation2 + $0x1] }
  0x6e   :  { %s94_s12 = vpop.sfrf %93 }
  0x6f   :  { %p116_p0 = scmp.ne.s32.totalorder %s94_s12, 0 }
  0x71   :  { %98 = shalt.err (%p116_p0)  }

</bundles_post_ra>
